<compile_context>
chip_gen: v7x
topology: tpu7x:2x2x1
jax: 0.10.0
libtpu: 0.0.40
codegen_flags: <defaults>
</compile_context>

<pallas_src>
import functools

import jax
import jax.numpy as jnp
from jax.experimental import pallas as pl
from jax.experimental.pallas import tpu as pltpu


def _round_up(n, m):
    return ((n + m - 1) // m) * m


def actor_kernel(x_ref, w1_ref, b1_ref, w2_ref, b2_ref, out_ref):
    # fc1 + ReLU: MXU matmul with f32 accumulation; bias/ReLU on the VPU in f32.
    h = jnp.dot(x_ref[...], w1_ref[...], preferred_element_type=jnp.float32)
    h = jnp.maximum(h + b1_ref[...], 0.0)
    # fc2: cast activations back to the MXU operand dtype, accumulate in f32.
    logits = jnp.dot(h.astype(w2_ref.dtype), w2_ref[...],
                     preferred_element_type=jnp.float32) + b2_ref[...]
    # Numerically stable softmax over the action (last) dim, all in f32.
    m = jnp.max(logits, axis=-1, keepdims=True)
    e = jnp.exp(logits - m)
    denom = jnp.sum(e, axis=-1, keepdims=True)
    r = pl.reciprocal(denom, approx=True)       # EUP slot, free after the exp
    r = r * (2.0 - denom * r)                   # one Newton step -> f32-exact
    out_ref[...] = (e * r).astype(out_ref.dtype)


def actor_forward(x, w1, b1, w2, b2, *, block_batch=1024):
    """Actor forward: softmax(relu(x @ w1 + b1) @ w2 + b2).

    x : (B, dim_state)         -- cast to the weight dtype for the MXU.
    w1: (dim_state, n_hidden)  -- weight dtype sets the MXU operand dtype
    b1: (1, n_hidden) float32     (bf16 recommended on v5e/v6e/v7x).
    w2: (n_hidden, n_action)
    b2: (1, n_action) float32
    Returns probs: (B, n_action) float32.
    """
    batch, dim_state = x.shape
    n_hidden = w1.shape[1]
    n_action = w2.shape[1]
    mm_dtype = jnp.dtype(w1.dtype)

    # Batch tile: multiple of the packed sublane count (8 f32 / 16 bf16),
    # as large as possible to amortize per-grid-step overhead.
    sub = max(8, 32 // mm_dtype.itemsize)
    tm = _round_up(min(block_batch, _round_up(batch, sub)), sub)
    # v7x megacore: if that leaves a single grid step and the batch allows it,
    # halve the tile so ("parallel",) can shard across both TensorCores.
    if _round_up(batch, tm) == tm and batch > sub:
        tm = _round_up(pl.cdiv(batch, 2), sub)
    b_pad = _round_up(batch, tm)

    # Only the batch dim is padded; zero rows give a finite softmax and are
    # sliced off below.
    xp = x.astype(mm_dtype)
    if b_pad != batch:
        xp = jnp.zeros((b_pad, dim_state), mm_dtype).at[:batch].set(xp)

    b1 = b1.astype(jnp.float32)
    b2 = b2.astype(jnp.float32)

    cost = pl.CostEstimate(
        flops=2 * batch * (dim_state * n_hidden + n_hidden * n_action),
        transcendentals=batch * n_action,
        bytes_accessed=(b_pad * dim_state * mm_dtype.itemsize
                        + (dim_state * n_hidden + n_hidden * n_action)
                        * mm_dtype.itemsize
                        + (n_hidden + n_action) * 4
                        + b_pad * n_action * 4),
    )

    out = pl.pallas_call(
        actor_kernel,
        out_shape=jax.ShapeDtypeStruct((b_pad, n_action), jnp.float32),
        grid_spec=pltpu.PrefetchScalarGridSpec(
            num_scalar_prefetch=0,
            grid=(b_pad // tm,),
            in_specs=[
                # x / out are pipelined over the batch; weights & biases use
                # constant index_maps so they stay resident in VMEM.
                # TODO(synk): at much larger layer widths, add
                # pipeline_mode=pl.Buffered(1) on the weight specs (or tile K)
                # and re-derive vmem_limit_bytes against v7x's 64 MiB VMEM.
                pl.BlockSpec((tm, dim_state), lambda i: (i, 0)),      # x tile
                pl.BlockSpec((dim_state, n_hidden), lambda i: (0, 0)),  # w1
                pl.BlockSpec((1, n_hidden), lambda i: (0, 0)),          # b1
                pl.BlockSpec((n_hidden, n_action), lambda i: (0, 0)),   # w2
                pl.BlockSpec((1, n_action), lambda i: (0, 0)),          # b2
            ],
            out_specs=pl.BlockSpec((tm, n_action), lambda i: (i, 0)),
        ),
        compiler_params=pltpu.CompilerParams(
            dimension_semantics=("parallel",),   # shard batch tiles on v7x
            vmem_limit_bytes=32 * 1024 * 1024,   # safe on v5e/v6e/v7x
        ),
        cost_estimate=cost,
    )(xp, w1, b1, w2, b2)

    return out[:batch]


def init_params(key, dim_state, n_action, n_hidden, dtype=jnp.float32):
    # Mimics nn.Linear's U(-1/sqrt(fan_in), +1/sqrt(fan_in)); weights stored
    # transposed vs. PyTorch so the kernel computes x @ w + b directly.
    # Matmul operands are cast ONCE here (not per forward call); biases stay f32.
    k1, k2, k3, k4 = jax.random.split(key, 4)
    bound1 = 1.0 / jnp.sqrt(dim_state)
    bound2 = 1.0 / jnp.sqrt(n_hidden)
    w1 = jax.random.uniform(k1, (dim_state, n_hidden), jnp.float32, -bound1, bound1)
    b1 = jax.random.uniform(k2, (1, n_hidden), jnp.float32, -bound1, bound1)
    w2 = jax.random.uniform(k3, (n_hidden, n_action), jnp.float32, -bound2, bound2)
    b2 = jax.random.uniform(k4, (1, n_action), jnp.float32, -bound2, bound2)
    return w1.astype(dtype), b1, w2.astype(dtype), b2


def _reference(x, w1, b1, w2, b2):
    h = jnp.maximum(x @ w1.astype(jnp.float32) + b1, 0.0)
    return jax.nn.softmax(h @ w2.astype(jnp.float32) + b2, axis=-1)


if __name__ == "__main__":
    dim_state, n_action, n_hidden = 16, 8, 32
    batch = 2

    key = jax.random.PRNGKey(0)
    kx, kp, kx2 = jax.random.split(key, 3)
    x = jax.random.normal(kx, (batch, dim_state), jnp.float32)

    # --- f32 path (matches PyTorch semantics exactly) ---
    w1, b1, w2, b2 = init_params(kp, dim_state, n_action, n_hidden)
    fwd = jax.jit(actor_forward)
    prob = fwd(x, w1, b1, w2, b2)
    jax.block_until_ready(prob)
    prob_ref = _reference(x, w1, b1, w2, b2)
    assert prob.shape == (batch, n_action)
    assert jnp.allclose(prob, prob_ref, atol=1e-5, rtol=1e-5)
    assert jnp.allclose(jnp.sum(prob, axis=-1), 1.0, atol=1e-5)

    # --- ragged batch / multi-tile grid path ---
    x_big = jax.random.normal(kx2, (10, dim_state), jnp.float32)
    fwd_small_tile = jax.jit(functools.partial(actor_forward, block_batch=8))
    prob_big = fwd_small_tile(x_big, w1, b1, w2, b2)
    jax.block_until_ready(prob_big)
    assert prob_big.shape == (10, n_action)
    assert jnp.allclose(prob_big, _reference(x_big, w1, b1, w2, b2),
                        atol=1e-5, rtol=1e-5)

    # --- bf16 MXU operands (recommended on v5e/v6e/v7x); softmax stays f32 ---
    w1b, b1b, w2b, b2b = init_params(kp, dim_state, n_action, n_hidden,
                                     dtype=jnp.bfloat16)
    prob_bf16 = fwd(x, w1b, b1b, w2b, b2b)
    jax.block_until_ready(prob_bf16)
    assert prob_bf16.shape == (batch, n_action)
    assert jnp.allclose(prob_bf16, prob_ref, atol=3e-2)
    assert jnp.allclose(jnp.sum(prob_bf16, axis=-1), 1.0, atol=1e-5)

    print("KERNEL_OK")
</pallas_src>

<mosaic_0001>
module attributes {stable_mosaic.version = 11 : i64} {
  func.func @actor_kernel(%arg0: i32, %arg1: memref<8x16xf32, #tpu.memory_space<vmem>>, %arg2: memref<16x32xf32, #tpu.memory_space<vmem>>, %arg3: memref<1x32xf32, #tpu.memory_space<vmem>>, %arg4: memref<32x8xf32, #tpu.memory_space<vmem>>, %arg5: memref<1x8xf32, #tpu.memory_space<vmem>>, %arg6: memref<8x8xf32, #tpu.memory_space<vmem>>) attributes {dimension_semantics = [#tpu.dimension_semantics<parallel>], iteration_bounds = array<i64: 1>, scalar_prefetch = 0 : i64, scratch_operands = 0 : i64, tpu.core_type = #tpu.core_type<tc>, window_params = [{transform_indices = @transform_0, window_bounds = array<i64: 8, 16>}, {pipeline_mode = #tpu.pipeline_mode<synchronous>, transform_indices = @transform_1, window_bounds = array<i64: 16, 32>}, {pipeline_mode = #tpu.pipeline_mode<synchronous>, transform_indices = @transform_2, window_bounds = array<i64: 1, 32>}, {pipeline_mode = #tpu.pipeline_mode<synchronous>, transform_indices = @transform_3, window_bounds = array<i64: 32, 8>}, {pipeline_mode = #tpu.pipeline_mode<synchronous>, transform_indices = @transform_4, window_bounds = array<i64: 1, 8>}, {transform_indices = @transform_5, window_bounds = array<i64: 8, 8>}]} {
    %c0 = arith.constant 0 : index
    %c0_0 = arith.constant 0 : index
    %0 = vector.load %arg1[%c0, %c0_0] : memref<8x16xf32, #tpu.memory_space<vmem>>, vector<8x16xf32>
    %c0_1 = arith.constant 0 : index
    %c0_2 = arith.constant 0 : index
    %1 = vector.load %arg2[%c0_1, %c0_2] : memref<16x32xf32, #tpu.memory_space<vmem>>, vector<16x32xf32>
    %cst = arith.constant dense<0.000000e+00> : vector<8x32xf32>
    %2 = tpu.matmul %0, %1, %cst {dimension_numbers = #tpu.dot_dimension_numbers<[1], [0], [0], [1], [0, 0, 1, 1], [], []>} : vector<8x16xf32>, vector<16x32xf32>, vector<8x32xf32> -> vector<8x32xf32>
    %c0_3 = arith.constant 0 : index
    %c0_4 = arith.constant 0 : index
    %3 = vector.load %arg3[%c0_3, %c0_4] : memref<1x32xf32, #tpu.memory_space<vmem>>, vector<1x32xf32>
    %4 = vector.broadcast %3 : vector<1x32xf32> to vector<8x32xf32>
    %5 = arith.addf %2, %4 : vector<8x32xf32>
    %cst_5 = arith.constant 0.000000e+00 : f32
    %6 = vector.broadcast %cst_5 : f32 to vector<8x32xf32>
    %7 = arith.maximumf %5, %6 : vector<8x32xf32>
    %c0_6 = arith.constant 0 : index
    %c0_7 = arith.constant 0 : index
    %8 = vector.load %arg4[%c0_6, %c0_7] : memref<32x8xf32, #tpu.memory_space<vmem>>, vector<32x8xf32>
    %cst_8 = arith.constant dense<0.000000e+00> : vector<8x8xf32>
    %9 = tpu.matmul %7, %8, %cst_8 {dimension_numbers = #tpu.dot_dimension_numbers<[1], [0], [0], [1], [0, 0, 1, 1], [], []>} : vector<8x32xf32>, vector<32x8xf32>, vector<8x8xf32> -> vector<8x8xf32>
    %c0_9 = arith.constant 0 : index
    %c0_10 = arith.constant 0 : index
    %10 = vector.load %arg5[%c0_9, %c0_10] : memref<1x8xf32, #tpu.memory_space<vmem>>, vector<1x8xf32>
    %11 = vector.broadcast %10 : vector<1x8xf32> to vector<8x8xf32>
    %12 = arith.addf %9, %11 : vector<8x8xf32>
    %cst_11 = arith.constant dense<0xFF800000> : vector<8xf32>
    %13 = vector.multi_reduction <maximumf>, %12, %cst_11 [1] : vector<8x8xf32> to vector<8xf32>
    %14 = vector.shape_cast %13 : vector<8xf32> to vector<8x1xf32>
    %15 = vector.broadcast %14 : vector<8x1xf32> to vector<8x8xf32>
    %16 = arith.subf %12, %15 : vector<8x8xf32>
    %17 = math.exp %16 : vector<8x8xf32>
    %cst_12 = arith.constant dense<0.000000e+00> : vector<8xf32>
    %18 = vector.multi_reduction <add>, %17, %cst_12 [1] : vector<8x8xf32> to vector<8xf32>
    %19 = vector.shape_cast %18 : vector<8xf32> to vector<8x1xf32>
    %20 = tpu.reciprocal %19 {approx = true} : vector<8x1xf32> -> vector<8x1xf32>
    %21 = arith.mulf %19, %20 : vector<8x1xf32>
    %cst_13 = arith.constant 2.000000e+00 : f32
    %22 = vector.broadcast %cst_13 : f32 to vector<8x1xf32>
    %23 = arith.subf %22, %21 : vector<8x1xf32>
    %24 = arith.mulf %20, %23 : vector<8x1xf32>
    %25 = vector.broadcast %24 : vector<8x1xf32> to vector<8x8xf32>
    %26 = arith.mulf %17, %25 : vector<8x8xf32>
    %c0_14 = arith.constant 0 : index
    %c0_15 = arith.constant 0 : index
    %27 = vector.load %arg6[%c0_14, %c0_15] : memref<8x8xf32, #tpu.memory_space<vmem>>, vector<8x8xf32>
    tpu.vector_store %arg6[%c0_14, %c0_15], %26 {strides = array<i32>} : memref<8x8xf32, #tpu.memory_space<vmem>>, vector<8x8xf32>,
    return
  }
  func.func @transform_0(%arg0: i32) -> (i32, i32) {
    %c0_i32 = arith.constant 0 : i32
    %c0_i32_0 = arith.constant 0 : i32
    return %arg0, %c0_i32 : i32, i32
  }
  func.func @transform_1(%arg0: i32) -> (i32, i32) {
    %c0_i32 = arith.constant 0 : i32
    %c0_i32_0 = arith.constant 0 : i32
    %c0_i32_1 = arith.constant 0 : i32
    return %c0_i32, %c0_i32_0 : i32, i32
  }
  func.func @transform_2(%arg0: i32) -> (i32, i32) {
    %c0_i32 = arith.constant 0 : i32
    %c0_i32_0 = arith.constant 0 : i32
    %c0_i32_1 = arith.constant 0 : i32
    return %c0_i32, %c0_i32_0 : i32, i32
  }
  func.func @transform_3(%arg0: i32) -> (i32, i32) {
    %c0_i32 = arith.constant 0 : i32
    %c0_i32_0 = arith.constant 0 : i32
    %c0_i32_1 = arith.constant 0 : i32
    return %c0_i32, %c0_i32_0 : i32, i32
  }
  func.func @transform_4(%arg0: i32) -> (i32, i32) {
    %c0_i32 = arith.constant 0 : i32
    %c0_i32_0 = arith.constant 0 : i32
    %c0_i32_1 = arith.constant 0 : i32
    return %c0_i32, %c0_i32_0 : i32, i32
  }
  func.func @transform_5(%arg0: i32) -> (i32, i32) {
    %c0_i32 = arith.constant 0 : i32
    %c0_i32_0 = arith.constant 0 : i32
    return %arg0, %c0_i32 : i32, i32
  }
}

</mosaic_0001>

<bundles_post_ra>
// kernel: actor_forward.1
= control target key start
LH: loop header
LB: loop body
LE: loop exit
PB: predicated region body
PF: predicated region fallthrough
CT: control target
= control target key end

     0   :  { %v256_v0 = vmov 0.0|0.0   ;;  %vm257_vm0 = vmmov 0   ;;  %v258_v3 = vmov 0.0   ;;  %vm30_vm1 = vcmask 130048   ;;  %s322_s1 = inlined_call_operand.vmem [shape: f32[16,32], index: 1, kind: input, shape index: {}]   ;;  %s323_s3 = inlined_call_operand.vmem [shape: f32[32,8], index: 3, kind: input, shape index: {}]   ;;  %s324_s0 = inlined_call_operand.vmem [shape: f32[8,16], index: 0, kind: input, shape index: {}]   ;;  %s325_s2 = inlined_call_operand.vmem [shape: f32[1,32], index: 2, kind: input, shape index: {}]   ;;  %s326_s4 = inlined_call_operand.vmem [shape: f32[1,8], index: 4, kind: input, shape index: {}]   ;;  %s327_s5 = inlined_call_operand.vmem [shape: f32[8,8], index: 5, kind: output, shape index: {}]  }
   0x1   :  { %240 = vmatprep.subr.bf16.mxu0 %v256_v0  ;;  %v21_v1 = vld [vmem:[%s322_s1] sm:$0xff]  ;;  %v22_v2 = vld [vmem:[%s322_s1 + $0x8] sm:$0xff]  ;;  %226 = vmatprep.mubr.msk.f32.mxu0 %vm257_vm0, %v258_v3  ;;  %v107_v9 = vld [vmem:[%s323_s3 + $0x10] sm:$0xff]  ;;  %vm116_vm2 = vcmask 261120   ;;  %vm190_vm3 = vcmask 64512  }
   0x2   :  { %v241_v4 = vpack.c.bf16 %v22_v2, %v21_v1  ;;  %243 = vmatprep.subr.bf16.mxu1 %v256_v0  ;;  %v105_v5 = vld [vmem:[%s323_s3] sm:$0xff]  ;;  %v106_v6 = vld [vmem:[%s323_s3 + $0x8] sm:$0xff]  ;;  %237 = vmatprep.mubr.msk.f32.mxu1 %vm257_vm0, %v258_v3  ;;  %v108_v10 = vld [vmem:[%s323_s3 + $0x18] sm:$0xff] }
   0x3   :  { %v244_v7 = vpack.c.bf16 %v106_v6, %v105_v5  ;;  %v20_v8 = vld [vmem:[%s324_s0] sm:$0xff]  ;;  %v247_v11 = vpack.c.bf16 %v108_v10, %v107_v9 }
   0x4   :  { %242 = vmatpush3.bf16.msra.mxu0 %v241_v4  ;;  %v210_v12 = vld [vmem:[%s325_s2] ss:$0 sm:$0xff] }
   0x5   :  { %245 = vmatpush3.bf16.msra.mxu1 %v244_v7  ;;  %v212_v17 = vld [vmem:[%s326_s4] ss:$0 sm:$0xff] }
   0x6   :  { %246 = vmatprep.subr.bf16.mxu1 %v256_v0 }
   0x7   :  { %227 = vmatmul.mubr.msk.f32.vlgmr.msra.gmra.mrb[0].mxu0 %vm30_vm1, %v20_v8 }
   0x9   :  { %248 = vmatpush3.bf16.msra.mxu1 %v247_v11 }
  0xda   :  { %v100_v13 = vpop.f32.mrb[0].mxu0 }
  0xdb   :  { %v101_v14 = vadd.f32 %v210_v12, %v100_v13  ;;  %v228_v15 = vpop.f32.mrb[1].mxu0 }
  0xdd   :  { %v104_v16 = vmax.f32 %v101_v14, 0.0 }
  0xdf   :  { %238 = vmatmul.mubr.msk.f32.vlgmr.msra.gmra.mrb[0].mxu1 %vm116_vm2, %v104_v16 }
 0x1b2   :  { %v186_v18 = vpop.f32.mrb[0].mxu1 }
 0x1b3   :  { %v187_v19 = vadd.f32 %v212_v17, %v186_v18  ;;  %v239_v20 = vpop.f32.mrb[1].mxu1 }
 0x1b5   :  { %v191_v21 = vsel %vm190_vm3, %v187_v19, -inf }
 0x1b6   :  { %192 = vmax.xlane.f32.xlu0 %v191_v21 }
 0x243   :  { %v193_v22 = vpop.xlane.xlu0 %192 }
 0x244   :  { %v194_v23 = vsub.f32 %v187_v19, %v193_v22 }
 0x246   :  { %v195_v24 = vmul.f32 1.442695, %v194_v23 }
 0x248   :  { %252 = vpow2.f32 %v195_v24 }
 0x252   :  { %v253_v25 = vpop.eup %252 }
 0x253   :  { %v197_v26 = vsel %vm190_vm3, %v253_v25, 0.0 }
 0x254   :  { %198 = vadd.xlane.f32.xlu0 %v197_v26 }
 0x2e1   :  { %v199_v27 = vpop.xlane.xlu0 %198 }
 0x2e2   :  { %254 = vrcp.f32 %v199_v27 }
 0x2ec   :  { %v255_v28 = vpop.eup %254 }
 0x2ed   :  { %v201_v29 = vmul.f32 %v255_v28, %v199_v27 }
 0x2ef   :  { %v202_v30 = vsub.f32 2.0, %v201_v29 }
 0x2f1   :  { %v203_v31 = vmul.f32 %v255_v28, %v202_v30 }
 0x2f3   :  { %v204_v32 = vmul.f32 %v253_v25, %v203_v31 }
 0x2f5   :  { %205 = vst.msk [vmem:[%s327_s5] sm:$0xff] %vm190_vm3, %v204_v32 }

</bundles_post_ra>
